<compile_context>
chip_gen: v5e
topology: v5e:2x2
jax: 0.10.0
libtpu: 0.0.40
codegen_flags: <defaults>
</compile_context>

<pallas_src>
import math
from functools import partial

import jax
import jax.numpy as jnp
from jax.experimental import pallas as pl
from jax.experimental.pallas import tpu as pltpu

# ----- "cfg" values (cfg.feature / cfg.training fields used by CustomLoss) ----
N_BATCH = 2
N_FRAME = 8
N_FFT = 30
WIN_LENGTH = 30          # cfg.feature.win_length
HOP_LENGTH = 8           # cfg.feature.hop_length
K = N_FFT // 2 + 1       # 16 frequency bins

# The original module implicitly assumes win_length//2+1 == n_fft//2+1 (same K).
assert WIN_LENGTH // 2 + 1 == K, "angle_freq length must match the number of freq bins"

TWO_PI = 2.0 * math.pi


def _wrap_angle(x):
    # torch.angle(torch.exp(1j*x)) wraps into (-pi, pi]; this wraps into [-pi, pi).
    # Only cos() of the result is consumed downstream, which is identical under
    # any 2*pi shift, so the two conventions are equivalent here.
    return x - TWO_PI * jnp.floor((x + math.pi) * (1.0 / TWO_PI))


# --------------------------- fused Pallas kernels -----------------------------
def _fused_bpd_kernel(x_ref, w_ref, b_ref, ph_ref, o_ref, *, n_freq, win_len, hop_len):
    # x: [B, T*K] lane-dense log-magnitudes, w: [T*K, T*K] block-diag weights,
    # b: [1, T*K] tiled bias, ph: [B, T*K] lane-dense phases, o: [1, 1] loss.
    B, D = ph_ref.shape
    T = D // n_freq

    # "self.model": per-frame linear K->K, folded into one lane-dense MXU matmul.
    pred = jnp.dot(x_ref[...], w_ref[...], preferred_element_type=jnp.float32)
    pred = pred + jnp.broadcast_to(b_ref[...], pred.shape)

    ph = ph_ref[...]
    # frame-adjacent diff: tpd[b, t*K+k] = phase[b, (t+1)*K+k] - phase[b, t*K+k]
    # pltpu.roll(ph, D-K)[i] == ph[(i+K) mod D]; the wrapped last frame is masked.
    ph_next = pltpu.roll(ph, shift=D - n_freq, axis=1)
    tpd = ph_next - ph

    # angle_freq generated in-kernel: af[lane] = 2*pi/win_len * (lane mod K) * hop
    lane_i = jax.lax.broadcasted_iota(jnp.int32, (B, D), 1)
    lane_f = lane_i.astype(jnp.float32)
    kk = lane_f - n_freq * jnp.floor(lane_f / float(n_freq))   # lane mod K (exact)
    afreq = (TWO_PI / float(win_len)) * float(hop_len) * kk

    bpd = _wrap_angle(tpd - afreq)
    contrib = -jnp.cos(pred - bpd)

    valid = lane_i < (T - 1) * n_freq            # frames 0..T-2 only
    masked = jnp.where(valid, contrib, 0.0)

    per_b = jnp.sum(masked, axis=1, keepdims=True)     # [B, 1]  (lane reduce)
    total = jnp.sum(per_b, axis=0, keepdims=True)      # [1, 1]
    o_ref[...] = total * (1.0 / float(B))              # mean over batch


def _fused_fpd_kernel(x_ref, w_ref, b_ref, ph_ref, o_ref, *, n_freq):
    B, D = ph_ref.shape

    pred = jnp.dot(x_ref[...], w_ref[...], preferred_element_type=jnp.float32)
    pred = pred + jnp.broadcast_to(b_ref[...], pred.shape)

    ph = ph_ref[...]
    # frequency-adjacent diff: fpd[b, t*K+k] = phase[b, t*K+k+1] - phase[b, t*K+k]
    ph_next = pltpu.roll(ph, shift=D - 1, axis=1)      # ph[(i+1) mod D]
    fpd = ph_next - ph
    contrib = -jnp.cos(pred - fpd)

    lane_i = jax.lax.broadcasted_iota(jnp.int32, (B, D), 1)
    lane_f = lane_i.astype(jnp.float32)
    kk = lane_f - n_freq * jnp.floor(lane_f / float(n_freq))   # lane mod K (exact)
    valid = kk < float(n_freq - 1)                     # bins 0..K-2 only
    masked = jnp.where(valid, contrib, 0.0)

    per_b = jnp.sum(masked, axis=1, keepdims=True)
    total = jnp.sum(per_b, axis=0, keepdims=True)
    o_ref[...] = total * (1.0 / float(B))


# --------------------------- wrapper -------------------------------------------
@partial(jax.jit, static_argnames=("mode",))
def custom_loss_forward(batch, mode, w, b):
    """Mirrors CustomLoss.forward (model = per-frame linear K->K)."""
    # TODO(synk): `self.model` is unspecified in the PyTorch module; realised here
    # as a deterministic per-frame linear layer K->K (weights w, bias b).
    logmag, phase = batch
    logmag = logmag.astype(jnp.float32)
    phase = phase.astype(jnp.float32)
    B, T, Kf = logmag.shape
    D = T * Kf

    # Lane-dense slabs: [B, T*K] = [2, 128]
    x_flat = logmag.reshape(B, D)
    ph_flat = phase.reshape(B, D)

    # Block-diagonal weight so predicted stays lane-dense: [T*K, T*K]
    w_big = jnp.kron(jnp.eye(T, dtype=jnp.float32), w.astype(jnp.float32))
    b_big = jnp.tile(b.astype(jnp.float32).reshape(1, Kf), (1, T))     # [1, T*K]

    if mode == "bpd":
        kernel = partial(_fused_bpd_kernel, n_freq=Kf,
                         win_len=WIN_LENGTH, hop_len=HOP_LENGTH)
    elif mode == "fpd":
        kernel = partial(_fused_fpd_kernel, n_freq=Kf)
    else:
        raise ValueError(mode)

    loss = pl.pallas_call(
        kernel,
        out_shape=jax.ShapeDtypeStruct((1, 1), jnp.float32),
        # No grid: single-shot, fully VMEM-resident (data is ~1 KB).
        in_specs=[pl.BlockSpec(memory_space=pltpu.MemorySpace.VMEM)] * 4,
        out_specs=pl.BlockSpec(memory_space=pltpu.MemorySpace.VMEM),
    )(x_flat, w_big, b_big, ph_flat)
    return loss[0, 0]


# --------------------------- pure-JAX reference (sanity check) ----------------
def _angle_freq():
    k = jnp.arange(0, WIN_LENGTH // 2 + 1, dtype=jnp.float32)
    af = (TWO_PI / WIN_LENGTH) * k * HOP_LENGTH
    return af.reshape(1, 1, -1)


def _ref_bpd(pred, phase):
    tpd = phase[:, 1:, :] - phase[:, :-1, :]
    x = tpd - _angle_freq()
    bpd = jnp.arctan2(jnp.sin(x), jnp.cos(x))
    diff = pred[:, :-1, :] - bpd
    loss = jnp.sum(jnp.sum(-jnp.cos(diff), axis=-1), axis=-1)
    return jnp.mean(loss)


def _ref_fpd(pred, phase):
    fpd = phase[:, :, 1:] - phase[:, :, :-1]
    diff = pred[:, :, :-1] - fpd
    loss = jnp.sum(jnp.sum(-jnp.cos(diff), axis=-1), axis=-1)
    return jnp.mean(loss)


# ------------------------------- main ------------------------------------------
if __name__ == "__main__":
    key = jax.random.PRNGKey(0)
    k1, k2 = jax.random.split(key)
    logmag = jax.random.normal(k1, (N_BATCH, N_FRAME, K), dtype=jnp.float32)
    phase = jax.random.uniform(
        k2, (N_BATCH, N_FRAME, K), dtype=jnp.float32,
        minval=-math.pi, maxval=math.pi)

    # deterministic synthetic "model" parameters
    wkey, bkey = jax.random.split(jax.random.PRNGKey(1234))
    w = jax.random.normal(wkey, (K, K), dtype=jnp.float32) / math.sqrt(K)
    b = 0.01 * jax.random.normal(bkey, (1, K), dtype=jnp.float32)

    loss_bpd = custom_loss_forward((logmag, phase), "bpd", w, b)
    loss_fpd = custom_loss_forward((logmag, phase), "fpd", w, b)
    jax.block_until_ready((loss_bpd, loss_fpd))

    # sanity check against a pure-JAX reference of the same forward pass
    predicted_ref = (logmag.reshape(-1, K) @ w + b).reshape(N_BATCH, -1, K)
    ref_b = _ref_bpd(predicted_ref, phase)
    ref_f = _ref_fpd(predicted_ref, phase)
    assert jnp.allclose(loss_bpd, ref_b, rtol=1e-4, atol=1e-4), (loss_bpd, ref_b)
    assert jnp.allclose(loss_fpd, ref_f, rtol=1e-4, atol=1e-4), (loss_fpd, ref_f)

    print("KERNEL_OK")
</pallas_src>

<mosaic_0001>
module attributes {stable_mosaic.version = 11 : i64} {
  func.func @_fused_bpd_kernel(%arg0: memref<2x128xf32, #tpu.memory_space<vmem>>, %arg1: memref<128x128xf32, #tpu.memory_space<vmem>>, %arg2: memref<1x128xf32, #tpu.memory_space<vmem>>, %arg3: memref<2x128xf32, #tpu.memory_space<vmem>>, %arg4: memref<1x1xf32, #tpu.memory_space<vmem>>) attributes {dimension_semantics = [], scalar_prefetch = 0 : i64, scratch_operands = 0 : i64, tpu.core_type = #tpu.core_type<tc>} {
    %c0 = arith.constant 0 : index
    %c0_0 = arith.constant 0 : index
    %0 = vector.load %arg0[%c0, %c0_0] : memref<2x128xf32, #tpu.memory_space<vmem>>, vector<2x128xf32>
    %c0_1 = arith.constant 0 : index
    %c0_2 = arith.constant 0 : index
    %1 = vector.load %arg1[%c0_1, %c0_2] : memref<128x128xf32, #tpu.memory_space<vmem>>, vector<128x128xf32>
    %cst = arith.constant dense<0.000000e+00> : vector<2x128xf32>
    %2 = tpu.matmul %0, %1, %cst {dimension_numbers = #tpu.dot_dimension_numbers<[1], [0], [0], [1], [0, 0, 1, 1], [], []>} : vector<2x128xf32>, vector<128x128xf32>, vector<2x128xf32> -> vector<2x128xf32>
    %c0_3 = arith.constant 0 : index
    %c0_4 = arith.constant 0 : index
    %3 = vector.load %arg2[%c0_3, %c0_4] : memref<1x128xf32, #tpu.memory_space<vmem>>, vector<1x128xf32>
    %4 = vector.shape_cast %3 : vector<1x128xf32> to vector<1x128xf32>
    %5 = vector.broadcast %4 : vector<1x128xf32> to vector<2x128xf32>
    %6 = arith.addf %2, %5 : vector<2x128xf32>
    %c0_5 = arith.constant 0 : index
    %c0_6 = arith.constant 0 : index
    %7 = vector.load %arg3[%c0_5, %c0_6] : memref<2x128xf32, #tpu.memory_space<vmem>>, vector<2x128xf32>
    %c112_i32 = arith.constant 112 : i32
    %8 = tpu.dynamic_rotate %7 by %c112_i32 dim 1 : vector<2x128xf32>, i32 -> vector<2x128xf32>
    %9 = arith.subf %8, %7 : vector<2x128xf32>
    %10 = tpu.iota {dimensions = array<i32: 1>} : vector<2x128xi32>
    %11 = arith.sitofp %10 : vector<2x128xi32> to vector<2x128xf32>
    %cst_7 = arith.constant 1.600000e+01 : f32
    %12 = vector.broadcast %cst_7 : f32 to vector<2x128xf32>
    %13 = arith.divf %11, %12 : vector<2x128xf32>
    %14 = math.floor %13 : vector<2x128xf32>
    %cst_8 = arith.constant 1.600000e+01 : f32
    %15 = vector.broadcast %cst_8 : f32 to vector<2x128xf32>
    %16 = arith.mulf %15, %14 : vector<2x128xf32>
    %17 = arith.subf %11, %16 : vector<2x128xf32>
    %cst_9 = arith.constant 1.67551613 : f32
    %18 = vector.broadcast %cst_9 : f32 to vector<2x128xf32>
    %19 = arith.mulf %18, %17 : vector<2x128xf32>
    %20 = arith.subf %9, %19 : vector<2x128xf32>
    %cst_10 = arith.constant 3.14159274 : f32
    %21 = vector.broadcast %cst_10 : f32 to vector<2x128xf32>
    %22 = arith.addf %20, %21 : vector<2x128xf32>
    %cst_11 = arith.constant 0.159154937 : f32
    %23 = vector.broadcast %cst_11 : f32 to vector<2x128xf32>
    %24 = arith.mulf %22, %23 : vector<2x128xf32>
    %25 = math.floor %24 : vector<2x128xf32>
    %cst_12 = arith.constant 6.28318548 : f32
    %26 = vector.broadcast %cst_12 : f32 to vector<2x128xf32>
    %27 = arith.mulf %26, %25 : vector<2x128xf32>
    %28 = arith.subf %20, %27 : vector<2x128xf32>
    %29 = arith.subf %6, %28 : vector<2x128xf32>
    %30 = math.cos %29 : vector<2x128xf32>
    %cst_13 = arith.constant 0.000000e+00 : f32
    %31 = vector.broadcast %cst_13 : f32 to vector<2x128xf32>
    %32 = arith.subf %31, %30 : vector<2x128xf32>
    %c112_i32_14 = arith.constant 112 : i32
    %33 = vector.broadcast %c112_i32_14 : i32 to vector<2x128xi32>
    %34 = arith.cmpi slt, %10, %33 : vector<2x128xi32>
    %cst_15 = arith.constant 0.000000e+00 : f32
    %35 = vector.broadcast %cst_15 : f32 to vector<2x128xf32>
    %36 = arith.select %34, %32, %35 : vector<2x128xi1>, vector<2x128xf32>
    %cst_16 = arith.constant dense<0.000000e+00> : vector<2xf32>
    %37 = vector.multi_reduction <add>, %36, %cst_16 [1] : vector<2x128xf32> to vector<2xf32>
    %38 = vector.shape_cast %37 : vector<2xf32> to vector<2x1xf32>
    %cst_17 = arith.constant dense<0.000000e+00> : vector<1xf32>
    %39 = vector.multi_reduction <add>, %38, %cst_17 [0] : vector<2x1xf32> to vector<1xf32>
    %40 = vector.shape_cast %39 : vector<1xf32> to vector<1x1xf32>
    %cst_18 = arith.constant 5.000000e-01 : f32
    %41 = vector.broadcast %cst_18 : f32 to vector<1x1xf32>
    %42 = arith.mulf %40, %41 : vector<1x1xf32>
    %c0_19 = arith.constant 0 : index
    %c0_20 = arith.constant 0 : index
    %43 = vector.load %arg4[%c0_19, %c0_20] : memref<1x1xf32, #tpu.memory_space<vmem>>, vector<1x1xf32>
    tpu.vector_store %arg4[%c0_19, %c0_20], %42 {strides = array<i32>} : memref<1x1xf32, #tpu.memory_space<vmem>>, vector<1x1xf32>,
    return
  }
}

</mosaic_0001>

<bundles_post_ra>
// kernel: custom_loss_forward.1
= control target key start
LH: loop header
LB: loop body
LE: loop exit
PB: predicated region body
PF: predicated region fallthrough
CT: control target
= control target key end

     0   :  { %s314_s25 = smov 112   ;;  %s475_s0 = inlined_call_operand.vmem [shape: f32[2,128], index: 0, kind: input, shape index: {}]   ;;  %s476_s1 = inlined_call_operand.vmem [shape: f32[128,128], index: 1, kind: input, shape index: {}]   ;;  %s477_s2 = inlined_call_operand.vmem [shape: f32[1,128], index: 2, kind: input, shape index: {}]   ;;  %s478_s3 = inlined_call_operand.vmem [shape: f32[2,128], index: 3, kind: input, shape index: {}]   ;;  %s479_s4 = inlined_call_operand.hbm [shape: f32[1,1], index: 4, kind: output, shape index: {}]  }
   0x1   :  { %v34_v0 = vld [vmem:[%s476_s1 + $0x78] sm:$0xff]  ;;  %v33_v1 = vld [vmem:[%s476_s1 + $0x70] sm:$0xff]  ;;  %v32_v2 = vld [vmem:[%s476_s1 + $0x68] sm:$0xff] }
   0x2   :  { %39 = vmatpush.msra.mxu0 %v34_v0  ;;  %v59_v3 = vld [vmem:[%s478_s3] sm:$0x3]  ;;  %v30_v5 = vld [vmem:[%s476_s1 + $0x58] sm:$0xff] }
   0x3   :  { %v31_v4 = vld [vmem:[%s476_s1 + $0x60] sm:$0xff]  ;;  %60 = vrot.lane.b32.xlu0 %v59_v3, %s314_s25 }
   0x4   :  { %40 = vmatpush.msra.mxu0 %v33_v1 }
   0x6   :  { %41 = vmatpush.msra.mxu0 %v32_v2 }
   0x7   :  { %9 = vsyncpa [#allocation3], 0  ;;  %v29_v6 = vld [vmem:[%s476_s1 + $0x50] sm:$0xff]  ;;  %v28_v7 = vld [vmem:[%s476_s1 + $0x48] sm:$0xff]  ;;  %v315_v18 = vmov 16.0   ;;  %v63_v22 = vlaneseq  ;;  %s263_s28 = sshll.u32 %s479_s4, 4  ;;  %s264_s28 = int_to_ptr.hbm [resolvable:$true] %s263_s28 }
   0x8   :  { %42 = vmatpush.msra.mxu0 %v31_v4  ;;  %v27_v8 = vld [vmem:[%s476_s1 + $0x40] sm:$0xff]  ;;  %v26_v9 = vld [vmem:[%s476_s1 + $0x38] sm:$0xff]  ;;  %v25_v10 = vld [vmem:[%s476_s1 + $0x30] sm:$0xff]  ;;  %286 = vrcp.f32 %v315_v18  ;;  %v316_v56 = vmov 2102212464  }
   0x9   :  { %v24_v11 = vld [vmem:[%s476_s1 + $0x28] sm:$0xff]  ;;  %v23_v12 = vld [vmem:[%s476_s1 + $0x20] sm:$0xff]  ;;  %v22_v13 = vld [vmem:[%s476_s1 + $0x18] sm:$0xff]  ;;  %v403_v24 = vand.u32 127, %v63_v22  ;;  %v317_v58 = vmov 920167782  }
   0xa   :  { %43 = vmatpush.msra.mxu0 %v30_v5  ;;  %v21_v14 = vld [vmem:[%s476_s1 + $0x10] sm:$0xff]  ;;  %v20_v15 = vld [vmem:[%s476_s1 + $0x8] sm:$0xff]  ;;  %v19_v16 = vld [vmem:[%s476_s1] sm:$0xff]  ;;  %v318_v61 = vmov 1326507024  }
   0xb   :  { %v18_v17 = vld [vmem:[%s475_s0] sm:$0x3]  ;;  %v65_v26 = vcvt.s32.f32 %v403_v24  ;;  %v319_v63 = vmov 683565275   ;;  %v320_v1 = vmov 2475754826  }
   0xc   :  { %44 = vmatpush.msra.mxu0 %v29_v6  ;;  %v285_v40 = vld [vmem:[%s477_s2] ss:$0 sm:$0xff]  ;;  %v321_v4 = vmov 2131351028   ;;  %s323_s2 = smov [#allocation2]  }
   0xd   :  { %s261_s25 = sshll.u32 %s323_s2, 4  ;;  %s262_s25 = int_to_ptr.vmem [resolvable:$true] %s261_s25 }
   0xe   :  { %45 = vmatpush.msra.mxu0 %v28_v7  ;;  %v287_v19 = vpop.eup %286 }
   0xf   :  { %v67_v20 = vmul.f32 16.0, %v287_v19  ;;  %vm71_vm0 = vweird.f32 %v287_v19 }
  0x10   :  { %46 = vmatpush.msra.mxu0 %v27_v8 }
  0x11   :  { %v68_v21 = vsub.f32 1.0, %v67_v20 }
  0x12   :  { %47 = vmatpush.msra.mxu0 %v26_v9 }
  0x13   :  { %v69_v23 = vmul.f32 %v287_v19, %v68_v21 }
  0x14   :  { %48 = vmatpush.msra.mxu0 %v25_v10 }
  0x15   :  { %v70_v25 = vadd.f32 %v287_v19, %v69_v23 }
  0x16   :  { %49 = vmatpush.msra.mxu0 %v24_v11 }
  0x17   :  { %v72_v27 = vsel %vm71_vm0, %v287_v19, %v70_v25 }
  0x18   :  { %50 = vmatpush.msra.mxu0 %v23_v12  ;;  %v73_v28 = vmul.f32 %v72_v27, %v65_v26 }
  0x1a   :  { %51 = vmatpush.msra.mxu0 %v22_v13  ;;  %v74_v29 = vfloor.f32 %v73_v28 }
  0x1c   :  { %52 = vmatpush.msra.mxu0 %v21_v14  ;;  %v75_v30 = vmul.f32 16.0, %v74_v29 }
  0x1e   :  { %53 = vmatpush.msra.mxu0 %v20_v15  ;;  %v76_v31 = vsub.f32 %v65_v26, %v75_v30 }
  0x20   :  { %54 = vmatpush.msra.mxu0 %v19_v16  ;;  %v77_v33 = vmul.f32 1.6755161, %v76_v31 }
  0x21   :  { %55 = vmatmul.f32.vlgmr.msra.gmra.mxu0 %v18_v17 }
  0x75   :  { %v61_v32 = vpop.permute.xlu0 %60 }
  0x76   :  { %v62_v34 = vsub.f32 %v61_v32, %v59_v3 }
  0x78   :  { %v78_v35 = vsub.f32 %v62_v34, %v77_v33 }
  0x7a   :  { %v79_v36 = vadd.f32 3.1415927, %v78_v35 }
  0x7c   :  { %v80_v37 = vmul.f32 0.15915494, %v79_v36 }
  0x7e   :  { %v81_v38 = vfloor.f32 %v80_v37 }
  0x80   :  { %v82_v39 = vmul.f32 6.2831855, %v81_v38 }
  0x82   :  { %v83_v43 = vsub.f32 %v78_v35, %v82_v39 }
  0x9e   :  { %v56_v41 = vpop.f32.mrf.mxu0 }
  0x9f   :  { %v57_v42 = vadd.f32 %v285_v40, %v56_v41 }
  0xa1   :  { %v409_v44 = vsub.f32 %v57_v42, %v83_v43  ;;  %v322_v43 = vmov 0  }
  0xa3   :  { %v88_v45 = vand.u32 2139095040, %v409_v44  ;;  %v85_v48 = vand.u32 2147483647, %v409_v44  ;;  %vm87_vm13 = vcmp.lt.s32.totalorder %v409_v44, 0 }
  0xa5   :  { %v89_v46 = vshrl.u32 %v88_v45, 23  ;;  %v92_v50 = vand.u32 8388607, %v85_v48  ;;  %vm461_vm14 = vcmp.le.f32.partialorder %v85_v48, 0.7853982 }
  0xa7   :  { %v272_v47 = vadd.s32 4294967169, %v89_v46  ;;  %v93_v54 = vor.u32 8388608, %v92_v50 }
  0xa9   :  { %v95_v49 = vadd.s32 1, %v272_v47  ;;  %v424_v11 = vshll.u32 %v93_v54, 8 }
  0xab   :  { %vm96_vm1 = vcmp.gt.s32.totalorder %v95_v49, 0  ;;  %v134_v21 = vand.u32 65535, %v424_v11  ;;  %v135_v23 = vshrl.u32 %v424_v11, 16 }
  0xac   :  { %v97_v51 = vsel %vm96_vm1, %v95_v49, 0 }
  0xad   :  { %v99_v52 = vand.u32 31, %v97_v51  ;;  %v417_v55 = vshrl.u32 %v97_v51, 5 }
  0xaf   :  { %v415_v53 = vsub.s32 32, %v99_v52  ;;  %v111_v57 = vshll.u32 %v316_v56, %v99_v52  ;;  %v114_v59 = vshll.u32 %v317_v58, %v99_v52  ;;  %v102_v0 = vshll.u32 %v319_v63, %v99_v52 }
  0xb0   :  { %v105_v3 = vshll.u32 %v320_v1, %v99_v52  ;;  %v108_v6 = vshll.u32 %v321_v4, %v99_v52  ;;  %vm120_vm2 = vcmp.lt.s32.totalorder %v417_v55, 4  ;;  %vm117_vm3 = vcmp.lt.s32.totalorder %v417_v55, 1 }
  0xb1   :  { %v112_v60 = vshrl.u32 %v317_v58, %v415_v53  ;;  %v115_v62 = vshrl.u32 %v318_v61, %v415_v53  ;;  %v103_v2 = vshrl.u32 %v320_v1, %v415_v53  ;;  %v106_v5 = vshrl.u32 %v321_v4, %v415_v53 }
  0xb2   :  { %v109_v7 = vshrl.u32 %v316_v56, %v415_v53  ;;  %vm119_vm4 = vcmp.lt.s32.totalorder %v417_v55, 3  ;;  %vm118_vm5 = vcmp.lt.s32.totalorder %v417_v55, 2  ;;  %v101_v50 = vshrl.u32 %v319_v63, %v415_v53 }
  0xb3   :  { %v113_v8 = vor.u32 %v112_v60, %v111_v57  ;;  %v116_v9 = vor.u32 %v115_v62, %v114_v59  ;;  %v104_v10 = vor.u32 %v103_v2, %v102_v0  ;;  %v107_v12 = vor.u32 %v106_v5, %v105_v3 }
  0xb4   :  { %v110_v13 = vor.u32 %v109_v7, %v108_v6 }
  0xb5   :  { %v126_v14 = vsel %vm120_vm2, %v113_v8, 920167782  ;;  %v130_v15 = vsel %vm120_vm2, %v116_v9, 1326507024  ;;  %v125_v16 = vsel %vm117_vm3, %v104_v10, %v107_v12  ;;  %v121_v58 = vsel %vm117_vm3, %v101_v50, %v104_v10 }
  0xb6   :  { %v127_v17 = vsel %vm119_vm4, %v110_v13, %v126_v14  ;;  %v129_v18 = vsel %vm117_vm3, %v107_v12, %v110_v13  ;;  %v131_v20 = vsel %vm119_vm4, %v113_v8, %v130_v15  ;;  %v122_v46 = vsel %vm120_vm2, %v110_v13, 2102212464 }
  0xb7   :  { %v128_v19 = vsel %vm118_vm5, %v125_v16, %v127_v17  ;;  %v132_v22 = vsel %vm118_vm5, %v129_v18, %v131_v20  ;;  %v123_v59 = vsel %vm119_vm4, %v107_v12, %v122_v46  ;;  %vm228_vm2 = vweird.f32 %v409_v44 }
  0xb8   :  { %v158_v25 = vand.u32 65535, %v128_v19  ;;  %v159_v26 = vshrl.u32 %v128_v19, 16  ;;  %v136_v27 = vand.u32 65535, %v132_v22  ;;  %v137_v28 = vshrl.u32 %v132_v22, 16 }
  0xb9   :  { %v124_v53 = vsel %vm118_vm5, %v121_v58, %v123_v59  ;;  %vm240_vm3 = vcmp.lt.s32.totalorder %v403_v24, 112  ;;  %vm242_vm4 = vcmask 1041408   ;;  %vm254_vm5 = vcmask 0  }
  0xba   :  { %v161_v29 = vmul.u32 %v159_v26, %v134_v21  ;;  %v162_v30 = vmul.u32 %v158_v25, %v135_v23  ;;  %v139_v31 = vmul.u32 %v137_v28, %v134_v21  ;;  %v140_v32 = vmul.u32 %v136_v27, %v135_v23 }
  0xbb   :  { %v160_v33 = vmul.u32 %v158_v25, %v134_v21  ;;  %v138_v35 = vmul.u32 %v136_v27, %v134_v21  ;;  %v163_v37 = vmul.u32 %v159_v26, %v135_v23  ;;  %v141_v38 = vmul.u32 %v137_v28, %v135_v23 }
  0xbc   :  { %v164_v34 = vshll.u32 %v161_v29, 16  ;;  %v142_v36 = vshll.u32 %v139_v31, 16  ;;  %v166_v39 = vshll.u32 %v162_v30, 16  ;;  %v144_v41 = vshll.u32 %v140_v32, 16 }
  0xbd   :  { %v165_v56 = vshrl.u32 %v161_v29, 16  ;;  %v143_v60 = vshrl.u32 %v139_v31, 16  ;;  %v167_v62 = vshrl.u32 %v162_v30, 16  ;;  %v145_v1 = vshrl.u32 %v140_v32, 16 }
  0xbe   :  { %vm168_vm6 = vc.u32 %v160_v33, %v164_v34  ;;  %v170_v40 = vadd.s32 %v164_v34, %v160_v33  ;;  %vm146_vm7 = vc.u32 %v138_v35, %v142_v36  ;;  %v148_v42 = vadd.s32 %v142_v36, %v138_v35 }
  0xbf   :  { %v169_v45 = vsel %vm168_vm6, 1, %v322_v43  ;;  %v147_v47 = vsel %vm146_vm7, 1, %v322_v43  ;;  %v178_v6 = vmul.u32 %v424_v11, %v124_v53 }
  0xc0   :  { %v171_v49 = vadd.s32 %v169_v45, %v163_v37  ;;  %vm172_vm8 = vc.u32 %v170_v40, %v166_v39  ;;  %v149_v51 = vadd.s32 %v147_v47, %v141_v38  ;;  %vm150_vm9 = vc.u32 %v148_v42, %v144_v41 }
  0xc1   :  { %v173_v52 = vsel %vm172_vm8, 1, %v322_v43  ;;  %v151_v54 = vsel %vm150_vm9, 1, %v322_v43  ;;  %v174_v4 = vadd.s32 %v170_v40, %v166_v39 }
  0xc2   :  { %v175_v57 = vadd.s32 %v173_v52, %v171_v49  ;;  %v153_v61 = vadd.s32 %v151_v54, %v149_v51 }
  0xc4   :  { %v176_v0 = vadd.s32 %v175_v57, %v165_v56  ;;  %v154_v2 = vadd.s32 %v153_v61, %v143_v60 }
  0xc6   :  { %v177_v63 = vadd.s32 %v176_v0, %v167_v62  ;;  %v155_v3 = vadd.s32 %v154_v2, %v145_v1 }
  0xc8   :  { %v181_v5 = vadd.s32 1, %v177_v63  ;;  %vm180_vm10 = vc.u32 %v155_v3, %v174_v4  ;;  %v179_v18 = vadd.s32 %v174_v4, %v155_v3 }
  0xca   :  { %v182_v7 = vsel %vm180_vm10, %v181_v5, %v177_v63 }
  0xcb   :  { %v183_v8 = vadd.s32 %v182_v7, %v178_v6 }
  0xcd   :  { %v184_v9 = vadd.s32 536870912, %v183_v8 }
  0xcf   :  { %v185_v10 = vshrl.u32 %v184_v9, 30 }
  0xd1   :  { %v186_v12 = vshll.u32 %v185_v10, 30  ;;  %v209_v37 = vsub.s32 4, %v185_v10 }
  0xd3   :  { %v187_v13 = vsub.s32 %v183_v8, %v186_v12  ;;  %v210_v42 = vsel %vm87_vm13, %v209_v37, %v185_v10 }
  0xd4   :  { %v212_v48 = vsel %vm461_vm14, 0, %v210_v42 }
  0xd5   :  { %vm188_vm11 = vcmp.lt.s32.totalorder %v187_v13, 0  ;;  %v189_v14 = vsub.s32 0, %v187_v13  ;;  %v229_v51 = vand.u32 3, %v212_v48 }
  0xd7   :  { %v190_v15 = vsel %vm188_vm11, %v189_v14, %v187_v13  ;;  %vm231_vm15 = vcmp.eq.s32.totalorder %v229_v51, 0  ;;  %vm234_vm0 = vcmp.eq.s32.totalorder %v229_v51, 2  ;;  %vm230_vm1 = vcmp.lt.s32.totalorder %v229_v51, 2 }
  0xd8   :  { %v191_v16 = vclz %v190_v15 }
  0xda   :  { %v273_v17 = vadd.s32 4294967294, %v191_v16 }
  0xdc   :  { %vm274_vm12 = vcmp.lt.s32.totalorder %v273_v17, 0 }
  0xdd   :  { %v194_v55 = vsel %vm274_vm12, 0, %v273_v17 }
  0xde   :  { %v195_v19 = vsub.s32 32, %v194_v55  ;;  %v199_v20 = vsub.s32 4294967266, %v194_v55  ;;  %v196_v21 = vshll.u32 %v187_v13, %v194_v55 }
  0xe0   :  { %v197_v22 = vshrl.u32 %v179_v18, %v195_v19  ;;  %v200_v11 = vadd.s32 127, %v199_v20 }
  0xe2   :  { %v198_v23 = vor.u32 %v197_v22, %v196_v21  ;;  %v201_v25 = vshll.u32 %v200_v11, 23 }
  0xe4   :  { %v202_v26 = vor.u32 4788187, %v201_v25  ;;  %v205_v28 = vcvt.s32.f32 %v198_v23 }
  0xe6   :  { %v203_v27 = vand.u32 2147483647, %v202_v26 }
  0xe8   :  { %v206_v29 = vmul.f32 %v205_v28, %v203_v27 }
  0xea   :  { %v207_v30 = vxor.u32 2147483648, %v206_v29 }
  0xec   :  { %v208_v32 = vsel %vm87_vm13, %v207_v30, %v206_v29 }
  0xed   :  { %v211_v33 = vsel %vm461_vm14, %v409_v44, %v208_v32 }
  0xee   :  { %v213_v34 = vmul.f32 %v211_v33, %v211_v33 }
  0xf0   :  { %v214_v35 = vmul.f32 -0.001358992, %v213_v34  ;;  %v221_v36 = vmul.f32 -0.00019511016, %v213_v34 }
  0xf2   :  { %v215_v38 = vadd.f32 0.041655596, %v214_v35  ;;  %v222_v39 = vadd.f32 0.008332121, %v221_v36 }
  0xf4   :  { %v216_v40 = vmul.f32 %v215_v38, %v213_v34  ;;  %v223_v41 = vmul.f32 %v222_v39, %v213_v34 }
  0xf6   :  { %v217_v43 = vadd.f32 -0.4999988, %v216_v40  ;;  %v224_v45 = vadd.f32 -0.16666654, %v223_v41 }
  0xf8   :  { %v218_v46 = vmul.f32 %v217_v43, %v213_v34  ;;  %v225_v47 = vmul.f32 %v224_v45, %v213_v34 }
  0xfa   :  { %v219_v49 = vadd.f32 1.0, %v218_v46  ;;  %v226_v50 = vadd.f32 1.0, %v225_v47 }
  0xfc   :  { %v227_v52 = vmul.f32 %v226_v50, %v211_v33  ;;  %v235_v54 = vxor.u32 2147483648, %v219_v49 }
  0xfe   :  { %v232_v56 = vxor.u32 2147483648, %v227_v52  ;;  %v236_v58 = vsel %vm234_vm0, %v235_v54, %v227_v52 }
 0x100   :  { %v233_v57 = vsel %vm231_vm15, %v219_v49, %v232_v56 }
 0x101   :  { %v237_v59 = vsel %vm230_vm1, %v233_v57, %v236_v58 }
 0x102   :  { %v238_v60 = vsel %vm228_vm2, nan, %v237_v59 }
 0x103   :  { %v239_v61 = vsub.f32 0.0, %v238_v60 }
 0x105   :  { %v241_v62 = vsel %vm240_vm3, %v239_v61, 0.0 }
 0x106   :  { %v243_v0 = vsel %vm242_vm4, %v241_v62, 0.0 }
 0x107   :  { %244 = vadd.xlane.f32.xlu0 %v243_v0 }
 0x17a   :  { %v245_v1 = vpop.xlane.xlu0 %244 }
 0x17b   :  { %v246_v2 = vsel %vm242_vm4, %v245_v1, 0.0 }
 0x17c   :  { %v247_v53 = vrot.slane %v246_v2, 4 }
 0x17e   :  { %v248_v63 = vadd.f32 %v247_v53, %v246_v2 }
 0x180   :  { %v249_v3 = vrot.slane %v248_v63, 2 }
 0x182   :  { %v250_v4 = vadd.f32 %v249_v3, %v248_v63 }
 0x184   :  { %v251_v5 = vrot.slane %v250_v4, 1 }
 0x186   :  { %v252_v44 = vadd.f32 %v251_v5, %v250_v4 }
 0x188   :  { %v253_v24 = vmul.f32 0.5, %v252_v44 }
 0x18a   :  { %255 = vst.msk [vmem:[#allocation2] sm:$0x1] %vm254_vm5, %v253_v24 }
 0x18b   :  { %266 = dma.vmem_to_hbm [thread:$0]  %s262_s25, 16, %s264_s28, [#allocation3]  }
 0x18c   :  { %312 = dma.done.wait [#allocation3], 16  }
 0x18d   :  { %313 = vsyncadd [#allocation3], 4294967280 }
 0x18e   :  { %271 = vsyncpa [#allocation3], 1 }

</bundles_post_ra>
